<compile_context>
chip_gen: v5e
topology: v5e:2x2
jax: 0.10.0
libtpu: 0.0.40
codegen_flags: <defaults>
</compile_context>

<pallas_src>
from functools import partial

import numpy as np
import jax
import jax.numpy as jnp
from jax.experimental import pallas as pl
from jax.experimental.pallas import tpu as pltpu


_FUSE_ROW_LIMIT = 2048        # every operand has <= this many rows -> fused single call
_DEFAULT_TILE_ROWS = 2048     # row tile for the tiled (large-n) path (safe on v5e/v6e/v7x)


# ---------------------------------------------------------------------------
# Shared math: Linear -> PReLU(single shared slope) -> Linear.
#   * first matmul:  bf16 operands on the MXU, f32 accumulation
#   * PReLU + second (tiny) matmul: f32 (parity with the f32 torch module)
# ---------------------------------------------------------------------------
def _mlp2_math(x, w1, b1, alpha, w2, b2):
    h = jnp.dot(x.astype(w1.dtype), w1,
                preferred_element_type=jnp.float32) + b1
    h = jnp.where(h > 0, h, alpha * h)                      # PReLU, f32 VPU
    return jnp.dot(h, w2.astype(jnp.float32),
                   preferred_element_type=jnp.float32) + b2


def mlp2_ref(x, params):
    """Pure-JAX reference performing the exact same casts / accumulation."""
    w1, b1, alpha, w2, b2 = params
    return _mlp2_math(x, w1, b1, alpha[0], w2, b2)


def _mlp2_cost(n, fin, hid, in_itemsize, out_itemsize):
    flops = 2 * n * (fin * hid + hid * hid)
    bytes_accessed = (n * fin * in_itemsize          # x read
                      + n * hid * out_itemsize       # output write
                      + fin * hid * 2                # W1 (bf16)
                      + hid * hid * 4                # W2 (f32)
                      + 2 * hid * 4)                 # biases
    return flops, bytes_accessed


def _round_up(v, m):
    return ((v + m - 1) // m) * m


def _choose_tile_rows(n, tile_rows):
    """Pick a row tile: multiple of 16 (bf16 sublanes) and a balanced,
    even-count grid so the v7x 2-TC megacore split gets equal work."""
    if n <= tile_rows:
        return n                              # single full block (always legal)
    g = -(-n // tile_rows)                    # cdiv
    if g % 2:                                 # even grid for 2 TensorCores
        g += 1
    tr = _round_up(-(-n // g), 16)
    return min(tile_rows, tr)


# ---------------------------------------------------------------------------
# Kernel 1: row-tiled MLP for large inputs.
# ---------------------------------------------------------------------------
def _mlp2_tiled_kernel(alpha_ref, x_ref, w1_ref, b1_ref, w2_ref, b2_ref, o_ref):
    o_ref[...] = _mlp2_math(
        x_ref[...], w1_ref[...], b1_ref[...], alpha_ref[0],
        w2_ref[...], b2_ref[...]).astype(o_ref.dtype)


def mlp2_pallas(x, params, *, tile_rows=_DEFAULT_TILE_ROWS,
                out_dtype=jnp.bfloat16):
    """Apply Linear -> PReLU -> Linear, tiled over rows.

    x streams in the caller's dtype (cast happens in-kernel); weights stay
    VMEM-resident across the row grid; output is written in `out_dtype`.
    """
    w1, b1, alpha, w2, b2 = params
    n, fin = x.shape
    hid = w1.shape[1]

    tr = _choose_tile_rows(n, tile_rows)
    grid = (pl.cdiv(n, tr),)                  # ragged last block: OOB rows dropped

    flops, bytes_accessed = _mlp2_cost(
        n, fin, hid, x.dtype.itemsize, jnp.dtype(out_dtype).itemsize)

    return pl.pallas_call(
        _mlp2_tiled_kernel,
        out_shape=jax.ShapeDtypeStruct((n, hid), out_dtype),
        grid=grid,
        in_specs=[
            pl.BlockSpec(memory_space=pltpu.MemorySpace.SMEM),   # PReLU slope (1,)
            pl.BlockSpec((tr, fin), lambda i: (i, 0)),           # x row tile
            pl.BlockSpec((fin, hid), lambda i: (0, 0)),          # W1 (resident, bf16)
            pl.BlockSpec((1, hid), lambda i: (0, 0)),            # b1 (f32)
            pl.BlockSpec((hid, hid), lambda i: (0, 0)),          # W2 (resident, f32)
            pl.BlockSpec((1, hid), lambda i: (0, 0)),            # b2 (f32)
        ],
        out_specs=pl.BlockSpec((tr, hid), lambda i: (i, 0)),
        compiler_params=pltpu.CompilerParams(
            dimension_semantics=("parallel",)),
        cost_estimate=pl.CostEstimate(
            flops=flops, transcendentals=0, bytes_accessed=bytes_accessed),
    )(alpha, x, w1, b1, w2, b2)


# ---------------------------------------------------------------------------
# Kernel 2: fully fused encoder (node + edge + global MLPs) in one launch.
#   Consolidated operands: alphas (3,) SMEM, biases (3,2,H), W2s (3,H,H).
# ---------------------------------------------------------------------------
def _encoder_fused_kernel(alpha_ref, x_ref, nw1_ref, e_ref, ew1_ref,
                          g_ref, gw1_ref, bias_ref, w2_ref,
                          xo_ref, eo_ref, uo_ref):
    nb = bias_ref[0]
    xo_ref[...] = _mlp2_math(x_ref[...], nw1_ref[...], nb[0], alpha_ref[0],
                             w2_ref[0], nb[1]).astype(xo_ref.dtype)
    eb = bias_ref[1]
    eo_ref[...] = _mlp2_math(e_ref[...], ew1_ref[...], eb[0], alpha_ref[1],
                             w2_ref[1], eb[1]).astype(eo_ref.dtype)
    gb = bias_ref[2]
    uo_ref[...] = _mlp2_math(g_ref[...], gw1_ref[...], gb[0], alpha_ref[2],
                             w2_ref[2], gb[1]).astype(uo_ref.dtype)


def encoder_fused_pallas(x, edge_attr, glob2, p_node, p_edge, p_glob, packed,
                         *, out_dtype=jnp.bfloat16):
    """One pallas_call computing all three encoder MLPs (small-graph path)."""
    alphas, biases, w2s = packed
    nw1, ew1, gw1 = p_node[0], p_edge[0], p_glob[0]
    hid = nw1.shape[1]

    vmem = pl.BlockSpec(memory_space=pltpu.MemorySpace.VMEM)
    smem = pl.BlockSpec(memory_space=pltpu.MemorySpace.SMEM)
    in_specs = [smem, vmem, vmem, vmem, vmem, vmem, vmem, vmem, vmem]

    out_shape = (
        jax.ShapeDtypeStruct((x.shape[0], hid), out_dtype),
        jax.ShapeDtypeStruct((edge_attr.shape[0], hid), out_dtype),
        jax.ShapeDtypeStruct((glob2.shape[0], hid), out_dtype),
    )
    out_specs = (vmem, vmem, vmem)

    out_isz = jnp.dtype(out_dtype).itemsize
    flops = bytes_accessed = 0
    for arr, w1 in ((x, nw1), (edge_attr, ew1), (glob2, gw1)):
        f, b = _mlp2_cost(arr.shape[0], arr.shape[1], hid,
                          arr.dtype.itemsize, out_isz)
        flops += f
        bytes_accessed += b

    return pl.pallas_call(
        _encoder_fused_kernel,
        out_shape=out_shape,
        in_specs=in_specs,
        out_specs=out_specs,
        cost_estimate=pl.CostEstimate(
            flops=flops, transcendentals=0, bytes_accessed=bytes_accessed),
    )(alphas, x, nw1, edge_attr, ew1, glob2, gw1, biases, w2s)


# ---------------------------------------------------------------------------
# Parameter construction (mimics torch.nn.Linear default init), pre-cast once.
#   W1: bf16 (streaming / MXU dtype)      b1, alpha, W2, b2: f32
# ---------------------------------------------------------------------------
def _init_linear(key, fin, fout):
    kw, kb = jax.random.split(key)
    bound = 1.0 / np.sqrt(fin)
    w = jax.random.uniform(kw, (fin, fout), jnp.float32, -bound, bound)
    b = jax.random.uniform(kb, (fout,), jnp.float32, -bound, bound)
    return w, b.reshape(1, fout)


def _init_mlp2(key, fin, hidden, stream_dtype):
    k1, k2 = jax.random.split(key)
    w1, b1 = _init_linear(k1, fin, hidden)
    w2, b2 = _init_linear(k2, hidden, hidden)
    alpha = jnp.full((1,), 0.25, jnp.float32)        # nn.PReLU() default slope
    return (w1.astype(stream_dtype), b1, alpha, w2, b2)


def _pack_fused(p_node, p_edge, p_glob):
    """Pack the per-branch scalars / small tensors into consolidated operands."""
    branches = (p_node, p_edge, p_glob)
    alphas = jnp.concatenate([p[2] for p in branches])                    # (3,)
    biases = jnp.stack([jnp.concatenate([p[1], p[4]], axis=0)
                        for p in branches])                               # (3,2,H)
    w2s = jnp.stack([p[3] for p in branches])                             # (3,H,H) f32
    return alphas, biases, w2s


def init_encoder_params(key, n_atom_feats, n_bond_feats, n_global_feats,
                        n_hidden, stream_dtype=jnp.bfloat16):
    k_node, k_prompt, k_edge, k_glob = jax.random.split(key, 4)
    params = {
        "node": _init_mlp2(k_node, n_atom_feats, n_hidden, stream_dtype),
        "node_prompt": _init_mlp2(k_prompt, n_atom_feats + n_hidden // 2,
                                  n_hidden, stream_dtype),
        "edge": _init_mlp2(k_edge, n_bond_feats, n_hidden, stream_dtype),
        "global": _init_mlp2(k_glob, n_global_feats, n_hidden, stream_dtype),
    }
    params["fused_main"] = _pack_fused(params["node"], params["edge"],
                                       params["global"])
    params["fused_prompt"] = _pack_fused(params["node_prompt"], params["edge"],
                                         params["global"])
    return params


# ---------------------------------------------------------------------------
# Encoder.forward
# ---------------------------------------------------------------------------
@partial(jax.jit, static_argnames=("n_graphs", "out_dtype"))
def encoder_forward(params, x, edge_attr, glob, energies, *, n_graphs,
                    out_dtype=jnp.bfloat16):
    # Static-shape branch, mirroring `if x.shape[1] == 200:` in the torch code.
    use_main = x.shape[1] == 200
    p_node = params["node"] if use_main else params["node_prompt"]
    packed = params["fused_main"] if use_main else params["fused_prompt"]

    glob2 = glob.reshape(-1, 2)

    max_rows = max(x.shape[0], edge_attr.shape[0], glob2.shape[0])
    if max_rows <= _FUSE_ROW_LIMIT:
        # Small graphs (benchmark shapes): one fused launch for all three MLPs.
        x_out, edge_out, u = encoder_fused_pallas(
            x, edge_attr, glob2, p_node, params["edge"], params["global"],
            packed, out_dtype=out_dtype)
    else:
        # Large graphs: row-tiled kernels; per-launch overhead is amortized.
        x_out = mlp2_pallas(x, p_node, out_dtype=out_dtype)
        edge_out = mlp2_pallas(edge_attr, params["edge"], out_dtype=out_dtype)
        u = mlp2_pallas(glob2, params["global"], out_dtype=out_dtype)

    e0, e1 = energies.shape
    energies_out = jnp.broadcast_to(energies.reshape(e0, 1, e1),
                                    (e0, n_graphs, e1))
    return x_out, edge_out, u, energies_out


def encoder_forward_with_batch(params, x, edge_attr, glob, batch, energies,
                               out_dtype=jnp.bfloat16):
    """Torch-signature convenience wrapper: computes len(batch.unique()) on the
    host, once, outside the jitted function (no sync inside the trace)."""
    n_graphs = int(np.unique(np.asarray(batch)).shape[0])
    return encoder_forward(params, x, edge_attr, glob, energies,
                           n_graphs=n_graphs, out_dtype=out_dtype)


# ---------------------------------------------------------------------------
if __name__ == "__main__":
    n_atom_feats, n_bond_feats, n_global_feats, n_hidden = 200, 6, 2, 32
    num_nodes, num_edges = 8, 16

    key = jax.random.PRNGKey(0)
    kp, kx, kxp, ke, kg, ken, kbig = jax.random.split(key, 7)

    params = init_encoder_params(kp, n_atom_feats, n_bond_feats,
                                 n_global_feats, n_hidden)

    # Features arrive in f32 (module-native dtype) -> the in-kernel cast path
    # is exercised; no wrapper-level astype pass over x.
    x = jax.random.normal(kx, (num_nodes, n_atom_feats), jnp.float32)
    x_prompt = jax.random.normal(
        kxp, (num_nodes, n_atom_feats + n_hidden // 2), jnp.float32)
    edge_attr = jax.random.normal(ke, (num_edges, n_bond_feats), jnp.float32)
    batch = jnp.array([0, 0, 0, 1, 1, 2, 2, 2], jnp.int32)              # 3 graphs
    glob = jax.random.normal(kg, (3 * 2,), jnp.float32)                 # -> (-1, 2)
    energies = jax.random.normal(ken, (3, 5), jnp.float32)

    # Main path (x.shape[1] == 200 -> node_encoder), fused single launch.
    x_out, edge_out, u_out, energies_out = encoder_forward_with_batch(
        params, x, edge_attr, glob, batch, energies)
    jax.block_until_ready((x_out, edge_out, u_out, energies_out))

    # Prompt path (x.shape[1] != 200 -> node_encoder_prompt).
    xp_out, _, _, _ = encoder_forward_with_batch(
        params, x_prompt, edge_attr, glob, batch, energies)
    jax.block_until_ready(xp_out)

    # Large-n path: exercise the row-tiled kernel (balanced 2-step grid,
    # ragged last block).
    x_big = jax.random.normal(kbig, (2500, n_atom_feats), jnp.float32)
    big_out = mlp2_pallas(x_big, params["node"])
    jax.block_until_ready(big_out)

    # Correctness vs pure-JAX reference using identical dtype handling.
    def _f32(a):
        return np.asarray(a.astype(jnp.float32))

    tol = dict(rtol=2e-2, atol=2e-2)
    np.testing.assert_allclose(_f32(x_out),
                               np.asarray(mlp2_ref(x, params["node"])), **tol)
    np.testing.assert_allclose(_f32(xp_out),
                               np.asarray(mlp2_ref(x_prompt, params["node_prompt"])), **tol)
    np.testing.assert_allclose(_f32(edge_out),
                               np.asarray(mlp2_ref(edge_attr, params["edge"])), **tol)
    np.testing.assert_allclose(_f32(u_out),
                               np.asarray(mlp2_ref(glob.reshape(-1, 2), params["global"])), **tol)
    np.testing.assert_allclose(_f32(big_out),
                               np.asarray(mlp2_ref(x_big, params["node"])), **tol)

    assert energies_out.shape == (3, 3, 5)
    assert x_out.shape == (num_nodes, n_hidden)
    assert edge_out.shape == (num_edges, n_hidden)
    assert u_out.shape == (3, n_hidden)
    assert big_out.shape == (2500, n_hidden)

    print("KERNEL_OK")
</pallas_src>

<mosaic_0001>
module attributes {stable_mosaic.version = 11 : i64} {
  func.func @_encoder_fused_kernel(%arg0: memref<3xf32, #tpu.memory_space<smem>>, %arg1: memref<8x200xf32, #tpu.memory_space<vmem>>, %arg2: memref<200x32xbf16, #tpu.memory_space<vmem>>, %arg3: memref<16x6xf32, #tpu.memory_space<vmem>>, %arg4: memref<6x32xbf16, #tpu.memory_space<vmem>>, %arg5: memref<3x2xf32, #tpu.memory_space<vmem>>, %arg6: memref<2x32xbf16, #tpu.memory_space<vmem>>, %arg7: memref<3x2x32xf32, #tpu.memory_space<vmem>>, %arg8: memref<3x32x32xf32, #tpu.memory_space<vmem>>, %arg9: memref<8x32xbf16, #tpu.memory_space<vmem>>, %arg10: memref<16x32xbf16, #tpu.memory_space<vmem>>, %arg11: memref<3x32xbf16, #tpu.memory_space<vmem>>) attributes {dimension_semantics = [], scalar_prefetch = 0 : i64, scratch_operands = 0 : i64, tpu.core_type = #tpu.core_type<tc>} {
    %c0 = arith.constant 0 : index
    %c0_0 = arith.constant 0 : index
    %c0_1 = arith.constant 0 : index
    %0 = vector.load %arg7[%c0, %c0_0, %c0_1] : memref<3x2x32xf32, #tpu.memory_space<vmem>>, vector<1x2x32xf32>
    %1 = vector.shape_cast %0 : vector<1x2x32xf32> to vector<2x32xf32>
    %c0_2 = arith.constant 0 : index
    %c0_3 = arith.constant 0 : index
    %2 = vector.load %arg1[%c0_2, %c0_3] : memref<8x200xf32, #tpu.memory_space<vmem>>, vector<8x200xf32>
    %c0_4 = arith.constant 0 : index
    %c0_5 = arith.constant 0 : index
    %3 = vector.load %arg2[%c0_4, %c0_5] : memref<200x32xbf16, #tpu.memory_space<vmem>>, vector<200x32xbf16>
    %4 = vector.extract_strided_slice %1 {offsets = [0, 0], sizes = [1, 32], strides = [1, 1]} : vector<2x32xf32> to vector<1x32xf32>
    %5 = vector.shape_cast %4 : vector<1x32xf32> to vector<32xf32>
    %c0_6 = arith.constant 0 : index
    %6 = memref.load %arg0[%c0_6] : memref<3xf32, #tpu.memory_space<smem>>
    %c0_7 = arith.constant 0 : index
    %c0_8 = arith.constant 0 : index
    %c0_9 = arith.constant 0 : index
    %7 = vector.load %arg8[%c0_7, %c0_8, %c0_9] : memref<3x32x32xf32, #tpu.memory_space<vmem>>, vector<1x32x32xf32>
    %8 = vector.shape_cast %7 : vector<1x32x32xf32> to vector<32x32xf32>
    %9 = vector.extract_strided_slice %1 {offsets = [1, 0], sizes = [1, 32], strides = [1, 1]} : vector<2x32xf32> to vector<1x32xf32>
    %10 = vector.shape_cast %9 : vector<1x32xf32> to vector<32xf32>
    %11 = arith.truncf %2 : vector<8x200xf32> to vector<8x200xbf16>
    %cst = arith.constant dense<0.000000e+00> : vector<8x32xf32>
    %12 = tpu.matmul %11, %3, %cst {dimension_numbers = #tpu.dot_dimension_numbers<[1], [0], [0], [1], [0, 0, 1, 1], [], []>} : vector<8x200xbf16>, vector<200x32xbf16>, vector<8x32xf32> -> vector<8x32xf32>
    %13 = vector.shape_cast %5 : vector<32xf32> to vector<1x32xf32>
    %14 = vector.broadcast %13 : vector<1x32xf32> to vector<8x32xf32>
    %15 = arith.addf %12, %14 : vector<8x32xf32>
    %cst_10 = arith.constant 0.000000e+00 : f32
    %16 = vector.broadcast %cst_10 : f32 to vector<8x32xf32>
    %17 = arith.cmpf ogt, %15, %16 : vector<8x32xf32>
    %18 = vector.broadcast %6 : f32 to vector<8x32xf32>
    %19 = arith.mulf %18, %15 : vector<8x32xf32>
    %20 = arith.select %17, %15, %19 : vector<8x32xi1>, vector<8x32xf32>
    %cst_11 = arith.constant dense<0.000000e+00> : vector<8x32xf32>
    %21 = tpu.matmul %20, %8, %cst_11 {dimension_numbers = #tpu.dot_dimension_numbers<[1], [0], [0], [1], [0, 0, 1, 1], [], []>} : vector<8x32xf32>, vector<32x32xf32>, vector<8x32xf32> -> vector<8x32xf32>
    %22 = vector.shape_cast %10 : vector<32xf32> to vector<1x32xf32>
    %23 = vector.broadcast %22 : vector<1x32xf32> to vector<8x32xf32>
    %24 = arith.addf %21, %23 : vector<8x32xf32>
    %25 = arith.truncf %24 : vector<8x32xf32> to vector<8x32xbf16>
    %c0_12 = arith.constant 0 : index
    %c0_13 = arith.constant 0 : index
    %26 = vector.load %arg9[%c0_12, %c0_13] : memref<8x32xbf16, #tpu.memory_space<vmem>>, vector<8x32xbf16>
    tpu.vector_store %arg9[%c0_12, %c0_13], %25 {strides = array<i32>} : memref<8x32xbf16, #tpu.memory_space<vmem>>, vector<8x32xbf16>,
    %c1 = arith.constant 1 : index
    %c0_14 = arith.constant 0 : index
    %c0_15 = arith.constant 0 : index
    %27 = vector.load %arg7[%c1, %c0_14, %c0_15] : memref<3x2x32xf32, #tpu.memory_space<vmem>>, vector<1x2x32xf32>
    %28 = vector.shape_cast %27 : vector<1x2x32xf32> to vector<2x32xf32>
    %c0_16 = arith.constant 0 : index
    %c0_17 = arith.constant 0 : index
    %29 = vector.load %arg3[%c0_16, %c0_17] : memref<16x6xf32, #tpu.memory_space<vmem>>, vector<16x6xf32>
    %c0_18 = arith.constant 0 : index
    %c0_19 = arith.constant 0 : index
    %30 = vector.load %arg4[%c0_18, %c0_19] : memref<6x32xbf16, #tpu.memory_space<vmem>>, vector<6x32xbf16>
    %31 = vector.extract_strided_slice %28 {offsets = [0, 0], sizes = [1, 32], strides = [1, 1]} : vector<2x32xf32> to vector<1x32xf32>
    %32 = vector.shape_cast %31 : vector<1x32xf32> to vector<32xf32>
    %c1_20 = arith.constant 1 : index
    %33 = memref.load %arg0[%c1_20] : memref<3xf32, #tpu.memory_space<smem>>
    %c1_21 = arith.constant 1 : index
    %c0_22 = arith.constant 0 : index
    %c0_23 = arith.constant 0 : index
    %34 = vector.load %arg8[%c1_21, %c0_22, %c0_23] : memref<3x32x32xf32, #tpu.memory_space<vmem>>, vector<1x32x32xf32>
    %35 = vector.shape_cast %34 : vector<1x32x32xf32> to vector<32x32xf32>
    %36 = vector.extract_strided_slice %28 {offsets = [1, 0], sizes = [1, 32], strides = [1, 1]} : vector<2x32xf32> to vector<1x32xf32>
    %37 = vector.shape_cast %36 : vector<1x32xf32> to vector<32xf32>
    %38 = arith.truncf %29 : vector<16x6xf32> to vector<16x6xbf16>
    %cst_24 = arith.constant dense<0.000000e+00> : vector<16x32xf32>
    %39 = tpu.matmul %38, %30, %cst_24 {dimension_numbers = #tpu.dot_dimension_numbers<[1], [0], [0], [1], [0, 0, 1, 1], [], []>} : vector<16x6xbf16>, vector<6x32xbf16>, vector<16x32xf32> -> vector<16x32xf32>
    %40 = vector.shape_cast %32 : vector<32xf32> to vector<1x32xf32>
    %41 = vector.broadcast %40 : vector<1x32xf32> to vector<16x32xf32>
    %42 = arith.addf %39, %41 : vector<16x32xf32>
    %cst_25 = arith.constant 0.000000e+00 : f32
    %43 = vector.broadcast %cst_25 : f32 to vector<16x32xf32>
    %44 = arith.cmpf ogt, %42, %43 : vector<16x32xf32>
    %45 = vector.broadcast %33 : f32 to vector<16x32xf32>
    %46 = arith.mulf %45, %42 : vector<16x32xf32>
    %47 = arith.select %44, %42, %46 : vector<16x32xi1>, vector<16x32xf32>
    %cst_26 = arith.constant dense<0.000000e+00> : vector<16x32xf32>
    %48 = tpu.matmul %47, %35, %cst_26 {dimension_numbers = #tpu.dot_dimension_numbers<[1], [0], [0], [1], [0, 0, 1, 1], [], []>} : vector<16x32xf32>, vector<32x32xf32>, vector<16x32xf32> -> vector<16x32xf32>
    %49 = vector.shape_cast %37 : vector<32xf32> to vector<1x32xf32>
    %50 = vector.broadcast %49 : vector<1x32xf32> to vector<16x32xf32>
    %51 = arith.addf %48, %50 : vector<16x32xf32>
    %52 = arith.truncf %51 : vector<16x32xf32> to vector<16x32xbf16>
    %c0_27 = arith.constant 0 : index
    %c0_28 = arith.constant 0 : index
    %53 = vector.load %arg10[%c0_27, %c0_28] : memref<16x32xbf16, #tpu.memory_space<vmem>>, vector<16x32xbf16>
    tpu.vector_store %arg10[%c0_27, %c0_28], %52 {strides = array<i32>} : memref<16x32xbf16, #tpu.memory_space<vmem>>, vector<16x32xbf16>,
    %c2 = arith.constant 2 : index
    %c0_29 = arith.constant 0 : index
    %c0_30 = arith.constant 0 : index
    %54 = vector.load %arg7[%c2, %c0_29, %c0_30] : memref<3x2x32xf32, #tpu.memory_space<vmem>>, vector<1x2x32xf32>
    %55 = vector.shape_cast %54 : vector<1x2x32xf32> to vector<2x32xf32>
    %c0_31 = arith.constant 0 : index
    %c0_32 = arith.constant 0 : index
    %56 = vector.load %arg5[%c0_31, %c0_32] : memref<3x2xf32, #tpu.memory_space<vmem>>, vector<3x2xf32>
    %c0_33 = arith.constant 0 : index
    %c0_34 = arith.constant 0 : index
    %57 = vector.load %arg6[%c0_33, %c0_34] : memref<2x32xbf16, #tpu.memory_space<vmem>>, vector<2x32xbf16>
    %58 = vector.extract_strided_slice %55 {offsets = [0, 0], sizes = [1, 32], strides = [1, 1]} : vector<2x32xf32> to vector<1x32xf32>
    %59 = vector.shape_cast %58 : vector<1x32xf32> to vector<32xf32>
    %c2_35 = arith.constant 2 : index
    %60 = memref.load %arg0[%c2_35] : memref<3xf32, #tpu.memory_space<smem>>
    %c2_36 = arith.constant 2 : index
    %c0_37 = arith.constant 0 : index
    %c0_38 = arith.constant 0 : index
    %61 = vector.load %arg8[%c2_36, %c0_37, %c0_38] : memref<3x32x32xf32, #tpu.memory_space<vmem>>, vector<1x32x32xf32>
    %62 = vector.shape_cast %61 : vector<1x32x32xf32> to vector<32x32xf32>
    %63 = vector.extract_strided_slice %55 {offsets = [1, 0], sizes = [1, 32], strides = [1, 1]} : vector<2x32xf32> to vector<1x32xf32>
    %64 = vector.shape_cast %63 : vector<1x32xf32> to vector<32xf32>
    %65 = arith.truncf %56 : vector<3x2xf32> to vector<3x2xbf16>
    %cst_39 = arith.constant dense<0.000000e+00> : vector<3x32xf32>
    %66 = tpu.matmul %65, %57, %cst_39 {dimension_numbers = #tpu.dot_dimension_numbers<[1], [0], [0], [1], [0, 0, 1, 1], [], []>} : vector<3x2xbf16>, vector<2x32xbf16>, vector<3x32xf32> -> vector<3x32xf32>
    %67 = vector.shape_cast %59 : vector<32xf32> to vector<1x32xf32>
    %68 = vector.broadcast %67 : vector<1x32xf32> to vector<3x32xf32>
    %69 = arith.addf %66, %68 : vector<3x32xf32>
    %cst_40 = arith.constant 0.000000e+00 : f32
    %70 = vector.broadcast %cst_40 : f32 to vector<3x32xf32>
    %71 = arith.cmpf ogt, %69, %70 : vector<3x32xf32>
    %72 = vector.broadcast %60 : f32 to vector<3x32xf32>
    %73 = arith.mulf %72, %69 : vector<3x32xf32>
    %74 = arith.select %71, %69, %73 : vector<3x32xi1>, vector<3x32xf32>
    %cst_41 = arith.constant dense<0.000000e+00> : vector<3x32xf32>
    %75 = tpu.matmul %74, %62, %cst_41 {dimension_numbers = #tpu.dot_dimension_numbers<[1], [0], [0], [1], [0, 0, 1, 1], [], []>} : vector<3x32xf32>, vector<32x32xf32>, vector<3x32xf32> -> vector<3x32xf32>
    %76 = vector.shape_cast %64 : vector<32xf32> to vector<1x32xf32>
    %77 = vector.broadcast %76 : vector<1x32xf32> to vector<3x32xf32>
    %78 = arith.addf %75, %77 : vector<3x32xf32>
    %79 = arith.truncf %78 : vector<3x32xf32> to vector<3x32xbf16>
    %c0_42 = arith.constant 0 : index
    %c0_43 = arith.constant 0 : index
    %80 = vector.load %arg11[%c0_42, %c0_43] : memref<3x32xbf16, #tpu.memory_space<vmem>>, vector<3x32xbf16>
    tpu.vector_store %arg11[%c0_42, %c0_43], %79 {strides = array<i32>} : memref<3x32xbf16, #tpu.memory_space<vmem>>, vector<3x32xbf16>,
    return
  }
}

</mosaic_0001>

<bundles_post_ra>
// kernel: encoder_forward.1
= control target key start
LH: loop header
LB: loop body
LE: loop exit
PB: predicated region body
PF: predicated region fallthrough
CT: control target
= control target key end

     0   :  { %17 = vsyncpa [#allocation4], 0  ;;  %s791_s0 = inlined_call_operand.vmem [shape: f32[3], index: 0, kind: input, shape index: {}]   ;;  %s792_s1 = inlined_call_operand.vmem [shape: f32[8,200], index: 1, kind: input, shape index: {}]   ;;  %s793_s2 = inlined_call_operand.vmem [shape: bf16[200,32], index: 2, kind: input, shape index: {}]   ;;  %s794_s3 = inlined_call_operand.vmem [shape: f32[16,6], index: 3, kind: input, shape index: {}]   ;;  %s795_s4 = inlined_call_operand.vmem [shape: bf16[6,32], index: 4, kind: input, shape index: {}]   ;;  %s796_s5 = inlined_call_operand.vmem [shape: f32[3,2], index: 5, kind: input, shape index: {}]   ;;  %s797_s6 = inlined_call_operand.vmem [shape: bf16[2,32], index: 6, kind: input, shape index: {}]   ;;  %s798_s7 = inlined_call_operand.vmem [shape: f32[3,2,32], index: 7, kind: input, shape index: {}]   ;;  %s799_s8 = inlined_call_operand.vmem [shape: f32[3,32,32], index: 8, kind: input, shape index: {}]   ;;  %s800_s9 = inlined_call_operand.hbm [shape: bf16[8,32], index: 9, kind: output, shape index: {0}]   ;;  %s801_s10 = inlined_call_operand.hbm [shape: bf16[16,32], index: 10, kind: output, shape index: {1}]   ;;  %s802_s11 = inlined_call_operand.hbm [shape: bf16[3,32], index: 11, kind: output, shape index: {2}]  }
   0x1   :  { %18 = vsyncpa [#allocation3], 0 }
   0x2   :  { %19 = vsyncpa [#allocation7], 0  ;;  %s25_s19 = sshll.u32 %s791_s0, 4  ;;  %s597_s20 = smov [#allocation2]   ;;  %s26_s19 = int_to_ptr.vmem [resolvable:$true] %s25_s19 }
   0x3   :  { %28 = dma.vmem_to_smem %s26_s19, 16, %s597_s20, [#allocation4]  }
   0x4   :  { %591 = dma.done.wait [#allocation4], 16  }
   0x5   :  { %592 = vsyncadd [#allocation4], 4294967280 }
   0x6   :  { %49 = sfence }
   0x7   :  { %v496_v0 = vld [vmem:[%s793_s2 + $0x38] sm:$0xff]  ;;  %v78_v1 = vld [vmem:[%s793_s2 + $0x60] sm:$0xf]  ;;  %vm245_vm0 = vcmask 1042432   ;;  %v495_v3 = vld [vmem:[%s793_s2 + $0x30] sm:$0xff]  ;;  %vm166_vm1 = vcmask 1043456  }
   0x8   :  { %v136_v2 = vunpack.c.l.b16 %v78_v1  ;;  %170 = vmatpush.bf16.msra.mxu0 %v496_v0  ;;  %v232_v5 = vld [vmem:[%s795_s4] sm:$0x7]  ;;  %vm320_vm2 = vcmask 1040384   ;;  %v231_v9 = vld [vmem:[%s794_s3 + $0x8] sm:$0xff]  ;;  %vm241_vm3 = vcmask 48128   ;;  %v500_v11 = vld [vmem:[%s793_s2 + $0x58] sm:$0xff] }
   0x9   :  { %v247_v6 = vsel %vm245_vm0, %v232_v5, 0  ;;  %v230_v7 = vld [vmem:[%s794_s3] sm:$0xff]  ;;  %v494_v10 = vld [vmem:[%s793_s2 + $0x28] sm:$0xff]  ;;  %v499_v16 = vld [vmem:[%s793_s2 + $0x50] sm:$0xff]  ;;  %vm316_vm4 = vcmask 15360   ;;  %vm162_vm5 = vcmask 588800  }
   0xa   :  { %v149_v4 = vpack.c.b16 %v136_v2, %v136_v2  ;;  %256 = vmatpush.bf16.msra.mxu3 %v247_v6  ;;  %v239_v12 = vpack.c.bf16 %v231_v9, %v230_v7  ;;  %v307_v13 = vld [vmem:[%s797_s6] sm:$0x1]  ;;  %v492_v17 = vld [vmem:[%s793_s2 + $0x18] sm:$0xff]  ;;  %v498_v18 = vld [vmem:[%s793_s2 + $0x48] sm:$0xff]  ;;  %s79_s29 = sld [smem:[#allocation2]]  ;;  %vm201_vm7 = vcmask 261120  }
   0xb   :  { %v322_v14 = vsel %vm320_vm2, %v307_v13, 0  ;;  %v493_v15 = vld [vmem:[%s793_s2 + $0x20] sm:$0xff]  ;;  %v491_v20 = vld [vmem:[%s793_s2 + $0x10] sm:$0xff]  ;;  %v53_v22 = vld [vmem:[%s792_s1 + $0x8] sm:$0xff]  ;;  %s473_s12 = sld [smem:[#allocation2 + $0x1]]  ;;  %s379_s22 = sshll.u32 %s800_s9, 4  ;;  %s380_s22 = int_to_ptr.hbm [resolvable:$true] %s379_s22 }
   0xc   :  { %v168_v8 = vsel %vm166_vm1, %v149_v4, 0  ;;  %171 = vmatpush.bf16.msra.mxu0 %v495_v3  ;;  %v306_v19 = vld [vmem:[%s796_s5] sm:$0x7]  ;;  %v85_v24 = vpack.c.bf16 %v53_v22, %v53_v22  ;;  %v490_v25 = vld [vmem:[%s793_s2 + $0x8] sm:$0xff]  ;;  %v83_v29 = vld [vmem:[%s799_s8 + $0x18] sm:$0xff]  ;;  %vm226_vm11 = vcmask 257024  }
   0xd   :  { %186 = vmatpush.bf16.msra.mxu1 %v168_v8  ;;  %478 = vmatmul.msk.bf16.vlgmr.msra.gmra.mxu3 %vm241_vm3, %v239_v12  ;;  %v497_v21 = vld [vmem:[%s793_s2 + $0x40] sm:$0xff]  ;;  %v314_v23 = vpack.c.bf16 %v306_v19, %v306_v19  ;;  %v82_v30 = vld [vmem:[%s799_s8 + $0x10] sm:$0xff]  ;;  %v81_v31 = vld [vmem:[%s799_s8 + $0x8] sm:$0xff]  ;;  %s599_s6 = smov [#allocation6]   ;;  %s389_s9 = sshll.u32 %s801_s10, 4  ;;  %vm366_vm12 = vcmask 254976   ;;  %s390_s9 = int_to_ptr.hbm [resolvable:$true] %s389_s9 }
   0xe   :  { %331 = vmatpush.bf16.msrb.mxu3 %v322_v14  ;;  %v489_v26 = vld [vmem:[%s793_s2] sm:$0xff]  ;;  %217 = vmatpush.msra.mxu2 %v83_v29  ;;  %v477_v33 = vld [vmem:[%s799_s8 + $0x38] sm:$0xff]  ;;  %v476_v34 = vld [vmem:[%s799_s8 + $0x30] sm:$0xff]  ;;  %s482_s2 = sld [smem:[#allocation2 + $0x2]]  ;;  %s387_s23 = sshll.u32 %s599_s6, 4  ;;  %s388_s23 = int_to_ptr.vmem [resolvable:$true] %s387_s23 }
   0xf   :  { %v52_v27 = vld [vmem:[%s792_s1] sm:$0xff]  ;;  %v475_v35 = vld [vmem:[%s799_s8 + $0x28] sm:$0xff]  ;;  %v486_v52 = vld [vmem:[%s799_s8 + $0x58] sm:$0xff]  ;;  %s600_s26 = smov 64   ;;  %s601_s0 = smov 4  }
  0x10   :  { %172 = vmatpush.bf16.msra.mxu0 %v494_v10  ;;  %v84_v28 = vpack.c.bf16 %v52_v27, %v52_v27  ;;  %218 = vmatpush.msra.mxu2 %v82_v30  ;;  %v80_v32 = vld [vmem:[%s799_s8] sm:$0xff]  ;;  %v197_v47 = vstv %s79_s29  ;;  %v485_v57 = vld [vmem:[%s799_s8 + $0x50] sm:$0xff]  ;;  %v484_v58 = vld [vmem:[%s799_s8 + $0x48] sm:$0xff]  ;;  %vm367_vm13 = vsmask.f32 1280  ;;  %s602_s27 = smov [#allocation8]  }
  0x11   :  { %187 = vmatpush.bf16.msra.mxu1 %v500_v11  ;;  %v474_v36 = vld [vmem:[%s799_s8 + $0x20] sm:$0xff]  ;;  %v265_v55 = vstv %s473_s12  ;;  %s401_s28 = sshll.u32 %s602_s27, 4  ;;  %s403_s10 = sshll.u32 %s802_s11, 4  ;;  %vm368_vm14 = vmand %vm366_vm12, %vm367_vm13  ;;  %s402_s28 = int_to_ptr.vmem [resolvable:$true] %s401_s28  ;;  %s404_s10 = int_to_ptr.hbm [resolvable:$true] %s403_s10 }
  0x12   :  { %219 = vmatpush.msra.mxu2 %v81_v31  ;;  %v51_v40 = vld [vmem:[%s798_s7] sm:$0x3]  ;;  %v756_v44 = vld [vmem:[%s798_s7 + $0x2] sm:$0x3]  ;;  %v481_v63 = vld [vmem:[%s798_s7 + $0x4] sm:$0x3] }
  0x13   :  { %v86_v41 = vperm.slane %v51_v40, 0  ;;  %v240_v49 = vperm.slane %v756_v44, 0  ;;  %v483_v60 = vld [vmem:[%s799_s8 + $0x40] sm:$0xff]  ;;  %v315_v1 = vperm.slane %v481_v63, 0  ;;  %v200_v7 = vperm.slane %v51_v40, 1  ;;  %s598_s8 = smov [#allocation5]  }
  0x14   :  { %173 = vmatpush.bf16.msra.mxu0 %v493_v15  ;;  %220 = vmatpush.msra.mxu2 %v80_v32  ;;  %v338_v4 = vstv %s482_s2  ;;  %s377_s21 = sshll.u32 %s598_s8, 4  ;;  %v270_v11 = vperm.slane %v756_v44, 1  ;;  %s378_s21 = int_to_ptr.vmem [resolvable:$true] %s377_s21 }
  0x15   :  { %188 = vmatpush.bf16.msra.mxu1 %v499_v16 }
  0x16   :  { %289 = vmatpush.msrb.mxu2 %v477_v33 }
  0x18   :  { %174 = vmatpush.bf16.msra.mxu0 %v492_v17  ;;  %290 = vmatpush.msrb.mxu2 %v476_v34 }
  0x19   :  { %189 = vmatpush.bf16.msra.mxu1 %v498_v18  ;;  %v341_v18 = vperm.slane %v481_v63, 1 }
  0x1a   :  { %291 = vmatpush.msrb.mxu2 %v475_v35 }
  0x1c   :  { %175 = vmatpush.bf16.msra.mxu0 %v491_v20  ;;  %292 = vmatpush.msrb.mxu2 %v474_v36 }
  0x1d   :  { %190 = vmatpush.bf16.msra.mxu1 %v497_v21  ;;  %487 = vmatmul.msk.bf16.vlgmr.msrb.gmra.mxu3 %vm316_vm4, %v314_v23  ;;  %v369_v21 = vld [vmem:[#allocation8] sm:$0x3] }
  0x20   :  { %470 = vmatmul.msk.bf16.vlgmr.msra.gmra.mxu1 %vm162_vm5, %v85_v24  ;;  %176 = vmatpush.bf16.msra.mxu0 %v490_v25 }
  0x24   :  { %177 = vmatpush.bf16.msra.mxu0 %v489_v26 }
  0x27   :  { %178 = vmatmul.bf16.vlgmr.msra.gmra.mxu0 %v84_v28 }
  0x90   :  { %v258_v37 = vpop.f32.mrf.mxu3 }
  0x91   :  { %v259_v53 = vadd.f32 %v258_v37, %v240_v49 }
  0x93   :  { %v266_v59 = vmul.f32 %v265_v55, %v259_v53  ;;  %vm263_vm8 = vcmp.gt.f32.partialorder %v259_v53, 0.0 }
  0x95   :  { %v268_v62 = vsel %vm263_vm8, %v259_v53, %v266_v59 }
  0x98   :  { %v260_v38 = vpop.f32.mrf.mxu3 }
  0x99   :  { %v261_v61 = vadd.f32 %v260_v38, %v240_v49 }
  0x9b   :  { %v267_v0 = vmul.f32 %v265_v55, %v261_v61  ;;  %vm264_vm9 = vcmp.gt.f32.partialorder %v261_v61, 0.0 }
  0x9d   :  { %v192_v39 = vpop.f32.mrf.mxu1  ;;  %v269_v3 = vsel %vm264_vm9, %v261_v61, %v267_v0 }
  0xa0   :  { %v333_v42 = vpop.f32.mrf.mxu3 }
  0xa1   :  { %v334_v2 = vadd.f32 %v333_v42, %v315_v1 }
  0xa3   :  { %v339_v5 = vmul.f32 %v338_v4, %v334_v2  ;;  %vm337_vm10 = vcmp.gt.f32.partialorder %v334_v2, 0.0 }
  0xa4   :  { %v179_v43 = vpop.f32.mrf.mxu0 }
  0xa5   :  { %v194_v45 = vpop.f32.mrf.mxu1  ;;  %v180_v46 = vadd.f32 %v179_v43, %v86_v41  ;;  %v340_v6 = vsel %vm337_vm10, %v334_v2, %v339_v5 }
  0xa7   :  { %v193_v48 = vadd.f32 %v192_v39, %v180_v46 }
  0xa8   :  { %v335_v51 = vpop.f32.mrf.mxu3 }
  0xa9   :  { %vm196_vm6 = vcmp.gt.f32.partialorder %v193_v48, 0.0  ;;  %v198_v50 = vmul.f32 %v197_v47, %v193_v48 }
  0xab   :  { %v199_v54 = vsel %vm196_vm6, %v193_v48, %v198_v50 }
  0xac   :  { %v181_v56 = vpop.f32.mrf.mxu0  ;;  %471 = vmatmul.msk.f32.vlgmr.msra.gmra.mxu2 %vm201_vm7, %v199_v54 }
  0xad   :  { %357 = vmatpush.msra.mxu2 %v486_v52 }
  0xaf   :  { %358 = vmatpush.msra.mxu2 %v485_v57 }
  0xb1   :  { %359 = vmatpush.msra.mxu2 %v484_v58 }
  0xb3   :  { %360 = vmatpush.msra.mxu2 %v483_v60 }
  0xb4   :  { %479 = vmatmul.msk.f32.vlgmr.msrb.gmra.mxu2 %vm201_vm7, %v268_v62 }
  0xbc   :  { %480 = vmatmul.msk.f32.gmra.mxu2 %vm201_vm7, %v269_v3 }
  0xc4   :  { %488 = vmatmul.msk.f32.vlgmr.msra.gmra.mxu2 %vm201_vm7, %v340_v6 }
 0x12f   :  { %v222_v8 = vpop.f32.mrf.mxu2 }
 0x130   :  { %v223_v9 = vadd.f32 %v222_v8, %v200_v7 }
 0x132   :  { %v225_v10 = vpack.c.bf16 %v223_v9, %v223_v9 }
 0x134   :  { %227 = vst.msk [vmem:[#allocation5] sm:$0xf] %vm226_vm11, %v225_v10 }
 0x135   :  { %382 = dma.vmem_to_hbm [thread:$0]  %s378_s21, 64, %s380_s22, [#allocation3]  }
 0x137   :  { %v294_v12 = vpop.f32.mrf.mxu2 }
 0x138   :  { %v295_v13 = vadd.f32 %v294_v12, %v270_v11 }
 0x13a   :  { %v300_v14 = vpack.c.bf16 %v295_v13, %v295_v13 }
 0x13c   :  { %302 = vst.msk [vmem:[#allocation6] sm:$0xf] %vm226_vm11, %v300_v14 }
 0x13f   :  { %v297_v15 = vpop.f32.mrf.mxu2 }
 0x140   :  { %v298_v16 = vadd.f32 %v297_v15, %v270_v11 }
 0x142   :  { %v301_v17 = vpack.c.bf16 %v298_v16, %v298_v16 }
 0x144   :  { %303 = vst.msk [vmem:[#allocation6 + $0x4] sm:$0xf] %vm226_vm11, %v301_v17 }
 0x145   :  { %395 = dma.vmem_to_hbm [thread:$0]  %s388_s23, 128, %s390_s9, [#allocation7], %s600_s26, %s600_s26, %s601_s0  }
 0x147   :  { %v362_v19 = vpop.f32.mrf.mxu2 }
 0x148   :  { %v363_v20 = vadd.f32 %v362_v19, %v341_v18 }
 0x14a   :  { %v365_v22 = vpack.c.bf16 %v363_v20, %v363_v20 }
 0x14c   :  { %v370_v23 = vsel %vm368_vm14, %v365_v22, %v369_v21 }
 0x14d   :  { %371 = vst [vmem:[#allocation8] sm:$0x3] %v370_v23 }
 0x14e   :  { %406 = dma.vmem_to_hbm [thread:$0]  %s402_s28, 32, %s404_s10, [#allocation7]  }
 0x14f   :  { %593 = dma.done.wait [#allocation3], 64  }
 0x150   :  { %594 = vsyncadd [#allocation3], 4294967232 }
 0x151   :  { %595 = dma.done.wait [#allocation7], 160  }
 0x152   :  { %596 = vsyncadd [#allocation7], 4294967136 }
 0x153   :  { %419 = vsyncpa [#allocation3], 1 }
 0x154   :  { %420 = vsyncpa [#allocation7], 1 }
 0x155   :  { %421 = vsyncpa [#allocation4], 1 }

</bundles_post_ra>
